<compile_context>
chip_gen: v5e
topology: v5e:2x2
jax: 0.10.0
libtpu: 0.0.40
codegen_flags: <defaults>
</compile_context>

<pallas_src>
import jax
import jax.numpy as jnp
from jax.experimental import pallas as pl
from jax.experimental.pallas import tpu as pltpu


def _make_mlp_kernel(dims, row_offsets):
    """Build the fused MLP+softmax kernel for a fixed layer-dim chain."""
    n_layers = len(dims) - 1

    def kernel(p_ref, x_ref, o_ref):
        # Activations are feature-major: (features, TB); batch on the lane axis.
        h = x_ref[...]
        for li in range(n_layers):
            in_d, out_d = dims[li], dims[li + 1]
            r0 = row_offsets[li]
            w_t = p_ref[r0:r0 + out_d, 0:in_d]           # (out, in)  == W.T
            b = p_ref[r0:r0 + out_d, in_d:in_d + 1]      # (out, 1)
            h = jnp.dot(w_t, h, preferred_element_type=jnp.float32) + b
            if li < n_layers - 1:
                h = jnp.maximum(h, 0.0)                  # ReLU
        # Numerically stable softmax over the feature axis (axis 0 here).
        m = jnp.max(h, axis=0, keepdims=True)
        e = jnp.exp(h - m)
        denom = jnp.sum(e, axis=0, keepdims=True)
        o_ref[...] = e * pl.reciprocal(denom, approx=True)

    return kernel


def pack_params(params):
    """Pack all (W, b) pairs into one padded f32 buffer.

    Layer l occupies rows [row_offsets[l], row_offsets[l] + out_l):
      columns [0, in_l) hold W_l.T, column in_l holds the bias.
    """
    outs = [w.shape[1] for w, _ in params]
    ins = [w.shape[0] for w, _ in params]
    rows_pad = max(8, -(-sum(outs) // 8) * 8)
    cols_pad = max(128, -(-(max(ins) + 1) // 128) * 128)
    packed = jnp.zeros((rows_pad, cols_pad), jnp.float32)
    row_offsets = []
    r = 0
    for w, b in params:
        in_d, out_d = w.shape
        packed = packed.at[r:r + out_d, 0:in_d].set(w.T)
        packed = packed.at[r:r + out_d, in_d].set(b)
        row_offsets.append(r)
        r += out_d
    return packed, tuple(row_offsets)


def mlp_forward(x, params, *, tb=None):
    """x: (B, input_dim) f32; params: list of (W, b) with W of shape (in, out).

    Equivalent to the PyTorch Model.forward: 4x (Linear+ReLU), Linear, Softmax(dim=1).
    """
    B, in_dim = x.shape
    dims = (in_dim,) + tuple(w.shape[1] for w, _ in params)
    out_dim = dims[-1]

    if tb is None:
        # Lane-aligned batch tile (>=128); larger tiles amortize the ~0.35us
        # per-grid-step overhead.  VMEM use stays tiny (<< limits) even at 1024.
        tb = min(1024, max(128, pl.next_power_of_2(B)))
    n_blocks = pl.cdiv(B, tb)
    b_pad = n_blocks * tb

    packed, row_offsets = pack_params(params)
    rows_pad, cols_pad = packed.shape

    # Feature-major layout with the batch padded to a multiple of the tile.
    x_t = jnp.zeros((in_dim, b_pad), jnp.float32).at[:, :B].set(x.T)

    kernel = _make_mlp_kernel(dims, row_offsets)

    out_t = pl.pallas_call(
        kernel,
        out_shape=jax.ShapeDtypeStruct((out_dim, b_pad), jnp.float32),
        grid=(n_blocks,),
        in_specs=[
            # Packed weights: constant index_map -> fetched once, VMEM-resident.
            pl.BlockSpec((rows_pad, cols_pad), lambda i: (0, 0)),
            # Activations: one (in_dim, tb) batch tile per grid step.
            pl.BlockSpec((in_dim, tb), lambda i: (0, i)),
        ],
        out_specs=pl.BlockSpec((out_dim, tb), lambda i: (0, i)),
        compiler_params=pltpu.CompilerParams(
            dimension_semantics=("parallel",)),
    )(packed, x_t)

    return out_t[:, :B].T


def init_params(key, input_dim=16, output_dim=7):
    """Deterministic init mimicking nn.Linear: layers 16->64->32->16->8->out."""
    dims = [input_dim, 64, 32, 16, 8, output_dim]
    params = []
    for i in range(len(dims) - 1):
        key, kw, kb = jax.random.split(key, 3)
        bound = 1.0 / (dims[i] ** 0.5)
        w = jax.random.uniform(kw, (dims[i], dims[i + 1]), jnp.float32, -bound, bound)
        b = jax.random.uniform(kb, (dims[i + 1],), jnp.float32, -bound, bound)
        params.append((w, b))
    return params


def mlp_reference(x, params):
    """Pure-JAX reference (same math as the PyTorch module's forward)."""
    h = x
    for i, (w, b) in enumerate(params):
        h = h @ w + b
        if i < len(params) - 1:
            h = jnp.maximum(h, 0.0)
    return jax.nn.softmax(h, axis=-1)


if __name__ == "__main__":
    key = jax.random.PRNGKey(0)
    key, kx = jax.random.split(key)

    input_dim, output_dim = 16, 7
    params = init_params(key, input_dim, output_dim)

    # Small demo batch (single grid block after lane padding).
    batch = 8
    x = jax.random.normal(kx, (batch, input_dim), dtype=jnp.float32)
    out = jax.block_until_ready(mlp_forward(x, params))
    ref = mlp_reference(x, params)
    assert out.shape == (batch, output_dim)
    assert bool(jnp.all(jnp.abs(jnp.sum(out, axis=1) - 1.0) < 5e-3))
    assert bool(jnp.max(jnp.abs(out - ref)) < 2e-3)

    # Second call exercising the multi-block batch grid (tiling + padding path).
    key, kx2 = jax.random.split(key)
    x2 = jax.random.normal(kx2, (300, input_dim), dtype=jnp.float32)
    out2 = jax.block_until_ready(mlp_forward(x2, params, tb=128))
    ref2 = mlp_reference(x2, params)
    assert out2.shape == (300, output_dim)
    assert bool(jnp.max(jnp.abs(out2 - ref2)) < 2e-3)

    print("KERNEL_OK")
</pallas_src>

<mosaic_0001>
module attributes {stable_mosaic.version = 11 : i64} {
  func.func @kernel(%arg0: i32, %arg1: memref<128x128xf32, #tpu.memory_space<vmem>>, %arg2: memref<16x128xf32, #tpu.memory_space<vmem>>, %arg3: memref<7x128xf32, #tpu.memory_space<vmem>>) attributes {dimension_semantics = [#tpu.dimension_semantics<parallel>], iteration_bounds = array<i64: 1>, scalar_prefetch = 0 : i64, scratch_operands = 0 : i64, tpu.core_type = #tpu.core_type<tc>, window_params = [{pipeline_mode = #tpu.pipeline_mode<synchronous>, transform_indices = @transform_0, window_bounds = array<i64: 128, 128>}, {transform_indices = @transform_1, window_bounds = array<i64: 16, 128>}, {transform_indices = @transform_2, window_bounds = array<i64: 7, 128>}]} {
    %c0 = arith.constant 0 : index
    %c0_0 = arith.constant 0 : index
    %0 = vector.load %arg2[%c0, %c0_0] : memref<16x128xf32, #tpu.memory_space<vmem>>, vector<16x128xf32>
    %c0_1 = arith.constant 0 : index
    %c0_2 = arith.constant 0 : index
    %1 = vector.load %arg1[%c0_1, %c0_2] : memref<128x128xf32, #tpu.memory_space<vmem>>, vector<64x16xf32>
    %c0_3 = arith.constant 0 : index
    %c16 = arith.constant 16 : index
    %2 = vector.load %arg1[%c0_3, %c16] : memref<128x128xf32, #tpu.memory_space<vmem>>, vector<64x1xf32>
    %cst = arith.constant dense<0.000000e+00> : vector<64x128xf32>
    %3 = tpu.matmul %1, %0, %cst {dimension_numbers = #tpu.dot_dimension_numbers<[1], [0], [0], [1], [0, 0, 1, 1], [], []>} : vector<64x16xf32>, vector<16x128xf32>, vector<64x128xf32> -> vector<64x128xf32>
    %4 = vector.broadcast %2 : vector<64x1xf32> to vector<64x128xf32>
    %5 = arith.addf %3, %4 : vector<64x128xf32>
    %cst_4 = arith.constant 0.000000e+00 : f32
    %6 = vector.broadcast %cst_4 : f32 to vector<64x128xf32>
    %7 = arith.maximumf %5, %6 : vector<64x128xf32>
    %c64 = arith.constant 64 : index
    %c0_5 = arith.constant 0 : index
    %8 = vector.load %arg1[%c64, %c0_5] : memref<128x128xf32, #tpu.memory_space<vmem>>, vector<32x64xf32>
    %c64_6 = arith.constant 64 : index
    %c64_7 = arith.constant 64 : index
    %9 = vector.load %arg1[%c64_6, %c64_7] : memref<128x128xf32, #tpu.memory_space<vmem>>, vector<32x1xf32>
    %cst_8 = arith.constant dense<0.000000e+00> : vector<32x128xf32>
    %10 = tpu.matmul %8, %7, %cst_8 {dimension_numbers = #tpu.dot_dimension_numbers<[1], [0], [0], [1], [0, 0, 1, 1], [], []>} : vector<32x64xf32>, vector<64x128xf32>, vector<32x128xf32> -> vector<32x128xf32>
    %11 = vector.broadcast %9 : vector<32x1xf32> to vector<32x128xf32>
    %12 = arith.addf %10, %11 : vector<32x128xf32>
    %cst_9 = arith.constant 0.000000e+00 : f32
    %13 = vector.broadcast %cst_9 : f32 to vector<32x128xf32>
    %14 = arith.maximumf %12, %13 : vector<32x128xf32>
    %c96 = arith.constant 96 : index
    %c0_10 = arith.constant 0 : index
    %15 = vector.load %arg1[%c96, %c0_10] : memref<128x128xf32, #tpu.memory_space<vmem>>, vector<16x32xf32>
    %c96_11 = arith.constant 96 : index
    %c32 = arith.constant 32 : index
    %16 = vector.load %arg1[%c96_11, %c32] : memref<128x128xf32, #tpu.memory_space<vmem>>, vector<16x1xf32>
    %cst_12 = arith.constant dense<0.000000e+00> : vector<16x128xf32>
    %17 = tpu.matmul %15, %14, %cst_12 {dimension_numbers = #tpu.dot_dimension_numbers<[1], [0], [0], [1], [0, 0, 1, 1], [], []>} : vector<16x32xf32>, vector<32x128xf32>, vector<16x128xf32> -> vector<16x128xf32>
    %18 = vector.broadcast %16 : vector<16x1xf32> to vector<16x128xf32>
    %19 = arith.addf %17, %18 : vector<16x128xf32>
    %cst_13 = arith.constant 0.000000e+00 : f32
    %20 = vector.broadcast %cst_13 : f32 to vector<16x128xf32>
    %21 = arith.maximumf %19, %20 : vector<16x128xf32>
    %c112 = arith.constant 112 : index
    %c0_14 = arith.constant 0 : index
    %22 = vector.load %arg1[%c112, %c0_14] : memref<128x128xf32, #tpu.memory_space<vmem>>, vector<8x16xf32>
    %c112_15 = arith.constant 112 : index
    %c16_16 = arith.constant 16 : index
    %23 = vector.load %arg1[%c112_15, %c16_16] : memref<128x128xf32, #tpu.memory_space<vmem>>, vector<8x1xf32>
    %cst_17 = arith.constant dense<0.000000e+00> : vector<8x128xf32>
    %24 = tpu.matmul %22, %21, %cst_17 {dimension_numbers = #tpu.dot_dimension_numbers<[1], [0], [0], [1], [0, 0, 1, 1], [], []>} : vector<8x16xf32>, vector<16x128xf32>, vector<8x128xf32> -> vector<8x128xf32>
    %25 = vector.broadcast %23 : vector<8x1xf32> to vector<8x128xf32>
    %26 = arith.addf %24, %25 : vector<8x128xf32>
    %cst_18 = arith.constant 0.000000e+00 : f32
    %27 = vector.broadcast %cst_18 : f32 to vector<8x128xf32>
    %28 = arith.maximumf %26, %27 : vector<8x128xf32>
    %c120 = arith.constant 120 : index
    %c0_19 = arith.constant 0 : index
    %29 = vector.load %arg1[%c120, %c0_19] : memref<128x128xf32, #tpu.memory_space<vmem>>, vector<7x8xf32>
    %c120_20 = arith.constant 120 : index
    %c8 = arith.constant 8 : index
    %30 = vector.load %arg1[%c120_20, %c8] : memref<128x128xf32, #tpu.memory_space<vmem>>, vector<7x1xf32>
    %cst_21 = arith.constant dense<0.000000e+00> : vector<7x128xf32>
    %31 = tpu.matmul %29, %28, %cst_21 {dimension_numbers = #tpu.dot_dimension_numbers<[1], [0], [0], [1], [0, 0, 1, 1], [], []>} : vector<7x8xf32>, vector<8x128xf32>, vector<7x128xf32> -> vector<7x128xf32>
    %32 = vector.broadcast %30 : vector<7x1xf32> to vector<7x128xf32>
    %33 = arith.addf %31, %32 : vector<7x128xf32>
    %cst_22 = arith.constant dense<0xFF800000> : vector<128xf32>
    %34 = vector.multi_reduction <maximumf>, %33, %cst_22 [0] : vector<7x128xf32> to vector<128xf32>
    %35 = vector.shape_cast %34 : vector<128xf32> to vector<1x128xf32>
    %36 = vector.broadcast %35 : vector<1x128xf32> to vector<7x128xf32>
    %37 = arith.subf %33, %36 : vector<7x128xf32>
    %38 = math.exp %37 : vector<7x128xf32>
    %cst_23 = arith.constant dense<0.000000e+00> : vector<128xf32>
    %39 = vector.multi_reduction <add>, %38, %cst_23 [0] : vector<7x128xf32> to vector<128xf32>
    %40 = vector.shape_cast %39 : vector<128xf32> to vector<1x128xf32>
    %41 = tpu.reciprocal %40 {approx = true} : vector<1x128xf32> -> vector<1x128xf32>
    %42 = vector.broadcast %41 : vector<1x128xf32> to vector<7x128xf32>
    %43 = arith.mulf %38, %42 : vector<7x128xf32>
    %c0_24 = arith.constant 0 : index
    %c0_25 = arith.constant 0 : index
    %44 = vector.load %arg3[%c0_24, %c0_25] : memref<7x128xf32, #tpu.memory_space<vmem>>, vector<7x128xf32>
    tpu.vector_store %arg3[%c0_24, %c0_25], %43 {strides = array<i32>} : memref<7x128xf32, #tpu.memory_space<vmem>>, vector<7x128xf32>,
    return
  }
  func.func @transform_0(%arg0: i32) -> (i32, i32) {
    %c0_i32 = arith.constant 0 : i32
    %c0_i32_0 = arith.constant 0 : i32
    %c0_i32_1 = arith.constant 0 : i32
    return %c0_i32, %c0_i32_0 : i32, i32
  }
  func.func @transform_1(%arg0: i32) -> (i32, i32) {
    %c0_i32 = arith.constant 0 : i32
    %c0_i32_0 = arith.constant 0 : i32
    return %c0_i32, %arg0 : i32, i32
  }
  func.func @transform_2(%arg0: i32) -> (i32, i32) {
    %c0_i32 = arith.constant 0 : i32
    %c0_i32_0 = arith.constant 0 : i32
    return %c0_i32, %arg0 : i32, i32
  }
}

</mosaic_0001>

<bundles_post_ra>
// kernel: tpu_custom_call.1
= control target key start
LH: loop header
LB: loop body
LE: loop exit
PB: predicated region body
PF: predicated region fallthrough
CT: control target
= control target key end

     0   :  { %7 = vsyncpa [#allocation3], 0  ;;  %s531_s0 = inlined_call_operand.hbm [shape: f32[128,128], index: 0, kind: input, shape index: {}]   ;;  %s532_s1 = inlined_call_operand.hbm [shape: f32[16,128], index: 1, kind: input, shape index: {}]   ;;  %s533_s2 = inlined_call_operand.hbm [shape: f32[7,128], index: 2, kind: output, shape index: {}]  }
   0x1   :  { %8 = vsyncpa [#allocation6], 0 }
   0x2   :  { %9 = vsyncpa [#allocation4], 0  ;;  %s14_s11 = sshll.u32 %s531_s0, 4  ;;  %s485_s12 = smov [#allocation2]   ;;  %s15_s11 = int_to_ptr.hbm [resolvable:$true] %s14_s11 }
   0x3   :  { %s16_s13 = sshll.u32 %s485_s12, 4  ;;  %s27_s16 = sshll.u32 %s532_s1, 4  ;;  %s17_s13 = int_to_ptr.vmem [resolvable:$true] %s16_s13  ;;  %s28_s16 = int_to_ptr.hbm [resolvable:$true] %s27_s16 }
   0x4   :  { %s486_s17 = smov 128   ;;  %s487_s18 = smov 8  }
   0x5   :  { %22 = dma.hbm_to_vmem [thread:$0]  %s15_s11, 2048, %s17_s13, [#allocation3], %s486_s17, %s486_s17, %s487_s18  }
   0x6   :  { %s488_s19 = smov [#allocation5]  }
   0x7   :  { %s29_s20 = sshll.u32 %s488_s19, 4  ;;  %s30_s20 = int_to_ptr.vmem [resolvable:$true] %s29_s20 }
   0x8   :  { %35 = dma.hbm_to_vmem [thread:$0]  %s28_s16, 256, %s30_s20, [#allocation6], %s486_s17, %s486_s17, %s487_s18  }
   0x9   :  { %479 = dma.done.wait [#allocation3], 2048  }
   0xa   :  { %480 = vsyncadd [#allocation3], 4294965248 }
   0xb   :  { %481 = dma.done.wait [#allocation6], 256  }
   0xc   :  { %482 = vsyncadd [#allocation6], 4294967040  ;;  %v489_v0 = vmov 16   ;;  %v51_v1 = vld [vmem:[#allocation2 + $0x28] sm:$0xff]  ;;  %v44_v3 = vld [vmem:[#allocation5] sm:$0xff]  ;;  %vm94_vm0 = vcmask 130048  }
   0xd   :  { %393 = vset.pattern.permute.xlu1 %v489_v0  ;;  %392 = vset.pattern.permute.xlu0 %v489_v0  ;;  %v45_v2 = vld [vmem:[#allocation5 + $0x8] sm:$0xff]  ;;  %v46_v4 = vld [vmem:[#allocation2] sm:$0xff]  ;;  %v53_v5 = vld [vmem:[#allocation2 + $0x38] sm:$0xff]  ;;  %v490_v30 = vmov 64   ;;  %vm184_vm1 = vcmask 523264   ;;  %v491_v52 = vmov 32  }
   0xe   :  { %394 = vset.pattern.permute.xlu2 %v489_v0  ;;  %81 = vperm.xlu1 %393, %v51_v1   ;;  %v49_v6 = vld [vmem:[#allocation2 + $0x18] sm:$0xff]  ;;  %v50_v7 = vld [vmem:[#allocation2 + $0x20] sm:$0xff]  ;;  %v47_v8 = vld [vmem:[#allocation2 + $0x8] sm:$0xff]  ;;  %vm238_vm2 = vcmask 261120   ;;  %vm303_vm3 = vcmask 64512   ;;  %vm326_vm4 = vcmask 1046528  }
   0xf   :  { %125 = vmatpush.msra.mxu0 %v45_v2  ;;  %381 = vmatpush.msra.mxu3 %v45_v2  ;;  %v52_v9 = vld [vmem:[#allocation2 + $0x30] sm:$0xff]  ;;  %v161_v29 = vld [vmem:[#allocation2 + $0x48] sm:$0xff]  ;;  %v163_v33 = vld [vmem:[#allocation2 + $0x58] sm:$0xff]  ;;  %s493_s0 = smov [#allocation7]   ;;  %s354_s23 = sshll.u32 %s533_s2, 4  ;;  %s355_s23 = int_to_ptr.hbm [resolvable:$true] %s354_s23 }
  0x10   :  { %91 = vperm.xlu0 %392, %v53_v5   ;;  %71 = vperm.xlu2 %394, %v49_v6   ;;  %v48_v10 = vld [vmem:[#allocation2 + $0x10] sm:$0xff]  ;;  %v160_v45 = vld [vmem:[#allocation2 + $0x40] sm:$0xff]  ;;  %v227_v51 = vld [vmem:[#allocation2 + $0x68] sm:$0xff]  ;;  %s352_s1 = sshll.u32 %s493_s0, 4  ;;  %s353_s1 = int_to_ptr.vmem [resolvable:$true] %s352_s1 }
  0x11   :  { %126 = vmatpush.msra.mxu0 %v44_v3  ;;  %382 = vmatpush.msra.mxu3 %v44_v3  ;;  %v162_v36 = vld [vmem:[#allocation2 + $0x50] sm:$0xff]  ;;  %v226_v50 = vld [vmem:[#allocation2 + $0x60] sm:$0xff] }
  0x12   :  { %365 = vmatmul.msk.f32.vlgmr.msra.gmra.mxu0 %vm94_vm0, %v46_v4  ;;  %370 = vmatmul.msk.f32.vlgmr.msra.gmra.mxu3 %vm94_vm0, %v51_v1  ;;  %v268_v3 = vld [vmem:[#allocation2 + $0x70] sm:$0xff] }
  0x16   :  { %76 = vperm.xlu1 %393, %v50_v7  }
  0x18   :  { %86 = vperm.xlu0 %392, %v52_v9   ;;  %66 = vperm.xlu2 %394, %v48_v10  }
  0x1a   :  { %366 = vmatmul.msk.f32.gmra.mxu0 %vm94_vm0, %v47_v8  ;;  %371 = vmatmul.msk.f32.gmra.mxu3 %vm94_vm0, %v52_v9 }
  0x1e   :  { %56 = vperm.xlu1 %393, %v46_v4  }
  0x20   :  { %61 = vperm.xlu0 %392, %v47_v8   ;;  %395 = vset.pattern.permute.xlu2 %v490_v30 }
  0x21   :  { %181 = vperm.xlu2 %395, %v163_v33  }
  0x22   :  { %367 = vmatmul.msk.f32.gmra.mxu0 %vm94_vm0, %v48_v10  ;;  %372 = vmatmul.msk.f32.gmra.mxu3 %vm94_vm0, %v53_v5 }
  0x26   :  { %397 = vset.pattern.permute.xlu1 %v490_v30 }
  0x27   :  { %171 = vperm.xlu1 %397, %v161_v29  }
  0x28   :  { %396 = vset.pattern.permute.xlu0 %v490_v30 }
  0x29   :  { %176 = vperm.xlu0 %396, %v162_v36   ;;  %166 = vperm.xlu2 %395, %v160_v45  }
  0x2a   :  { %368 = vmatmul.msk.f32.gmra.mxu0 %vm94_vm0, %v49_v6 }
  0x2f   :  { %398 = vset.pattern.permute.xlu1 %v491_v52 }
  0x30   :  { %235 = vperm.xlu1 %398, %v227_v51  }
  0x31   :  { %400 = vset.pattern.permute.xlu0 %v489_v0  ;;  %399 = vset.pattern.permute.xlu2 %v491_v52 }
  0x32   :  { %369 = vmatmul.msk.f32.gmra.mxu0 %vm94_vm0, %v50_v7  ;;  %230 = vperm.xlu2 %399, %v226_v50  }
  0x33   :  { %271 = vperm.xlu0 %400, %v268_v3  }
  0x6a   :  { %v72_v18 = vpop.permute.xlu2 %71 }
  0x72   :  { %v67_v31 = vpop.permute.xlu2 %66 }
  0x7b   :  { %v182_v53 = vpop.permute.xlu2 %181 }
  0x80   :  { %v82_v16 = vpop.permute.xlu1 %81 }
  0x82   :  { %v92_v14 = vpop.permute.xlu0 %91 }
  0x83   :  { %v167_v60 = vpop.permute.xlu2 %166 }
  0x88   :  { %v77_v24 = vpop.permute.xlu1 %76 }
  0x8a   :  { %v87_v19 = vpop.permute.xlu0 %86 }
  0x8c   :  { %v231_v5 = vpop.permute.xlu2 %230 }
  0x8f   :  { %v128_v11 = vpop.f32.mrf.mxu0 }
  0x90   :  { %v57_v40 = vpop.permute.xlu1 %56 }
  0x91   :  { %v129_v43 = vadd.f32 %v128_v11, %v57_v40 }
  0x92   :  { %v62_v37 = vpop.permute.xlu0 %61 }
  0x93   :  { %v152_v47 = vmax.f32 %v129_v43, 0.0 }
  0x95   :  { %v143_v12 = vpop.f32.mrf.mxu3 }
  0x96   :  { %v144_v25 = vadd.f32 %v143_v12, %v82_v16  ;;  %v297_v12 = vld [vmem:[#allocation2 + $0x78] sm:$0x7f] }
  0x97   :  { %v131_v13 = vpop.f32.mrf.mxu0 }
  0x98   :  { %v157_v28 = vmax.f32 %v144_v25, 0.0  ;;  %v132_v41 = vadd.f32 %v131_v13, %v62_v37  ;;  %v492_v13 = vmov 8  }
  0x99   :  { %v172_v56 = vpop.permute.xlu1 %171  ;;  %401 = vset.pattern.permute.xlu1 %v492_v13  ;;  %402 = vset.pattern.permute.xlu0 %v492_v13 }
  0x9a   :  { %v153_v46 = vmax.f32 %v132_v41, 0.0  ;;  %300 = vperm.xlu1 %401, %v297_v12  }
  0x9b   :  { %v177_v55 = vpop.permute.xlu0 %176 }
  0x9d   :  { %v146_v15 = vpop.f32.mrf.mxu3 }
  0x9e   :  { %v147_v21 = vadd.f32 %v146_v15, %v87_v19 }
  0x9f   :  { %v134_v17 = vpop.f32.mrf.mxu0 }
  0xa0   :  { %v158_v27 = vmax.f32 %v147_v21, 0.0  ;;  %v135_v38 = vadd.f32 %v134_v17, %v67_v31 }
  0xa2   :  { %v154_v44 = vmax.f32 %v135_v38, 0.0  ;;  %v236_v6 = vpop.permute.xlu1 %235 }
  0xa5   :  { %v149_v20 = vpop.f32.mrf.mxu3 }
  0xa6   :  { %v150_v23 = vadd.f32 %v149_v20, %v92_v14  ;;  %v272_v14 = vpop.permute.xlu0 %271 }
  0xa7   :  { %v137_v22 = vpop.f32.mrf.mxu0 }
  0xa8   :  { %v159_v26 = vmax.f32 %v150_v23, 0.0  ;;  %v138_v34 = vadd.f32 %v137_v22, %v72_v18 }
  0xaa   :  { %201 = vmatpush.msra.mxu1 %v159_v26  ;;  %v155_v42 = vmax.f32 %v138_v34, 0.0 }
  0xac   :  { %202 = vmatpush.msra.mxu1 %v158_v27 }
  0xae   :  { %203 = vmatpush.msra.mxu1 %v157_v28 }
  0xaf   :  { %v140_v32 = vpop.f32.mrf.mxu0 }
  0xb0   :  { %v141_v35 = vadd.f32 %v140_v32, %v77_v24 }
  0xb2   :  { %v156_v39 = vmax.f32 %v141_v35, 0.0 }
  0xb4   :  { %204 = vmatpush.msra.mxu1 %v156_v39 }
  0xb6   :  { %205 = vmatpush.msra.mxu1 %v155_v42 }
  0xb8   :  { %206 = vmatpush.msra.mxu1 %v154_v44 }
  0xba   :  { %207 = vmatpush.msra.mxu1 %v153_v46 }
  0xbc   :  { %208 = vmatpush.msra.mxu1 %v152_v47 }
  0xbd   :  { %373 = vmatmul.msk.f32.vlgmr.msra.gmra.mxu1 %vm184_vm1, %v160_v45 }
  0xc5   :  { %374 = vmatmul.msk.f32.gmra.mxu1 %vm184_vm1, %v161_v29 }
  0xcd   :  { %375 = vmatmul.msk.f32.gmra.mxu1 %vm184_vm1, %v162_v36 }
  0xd5   :  { %376 = vmatmul.msk.f32.gmra.mxu1 %vm184_vm1, %v163_v33 }
 0x10c   :  { %v301_v18 = vpop.permute.xlu1 %300 }
 0x13a   :  { %v210_v48 = vpop.f32.mrf.mxu1 }
 0x13b   :  { %v211_v63 = vadd.f32 %v210_v48, %v167_v60 }
 0x13d   :  { %v222_v2 = vmax.f32 %v211_v63, 0.0 }
 0x142   :  { %v213_v49 = vpop.f32.mrf.mxu1 }
 0x143   :  { %v214_v61 = vadd.f32 %v213_v49, %v172_v56 }
 0x145   :  { %v223_v1 = vmax.f32 %v214_v61, 0.0 }
 0x14a   :  { %v216_v54 = vpop.f32.mrf.mxu1 }
 0x14b   :  { %v217_v58 = vadd.f32 %v216_v54, %v177_v55 }
 0x14d   :  { %v224_v0 = vmax.f32 %v217_v58, 0.0 }
 0x152   :  { %v219_v57 = vpop.f32.mrf.mxu1 }
 0x153   :  { %v220_v59 = vadd.f32 %v219_v57, %v182_v53 }
 0x155   :  { %v225_v62 = vmax.f32 %v220_v59, 0.0 }
 0x157   :  { %255 = vmatpush.msra.mxu2 %v225_v62 }
 0x159   :  { %256 = vmatpush.msra.mxu2 %v224_v0 }
 0x15b   :  { %257 = vmatpush.msra.mxu2 %v223_v1 }
 0x15d   :  { %258 = vmatpush.msra.mxu2 %v222_v2 }
 0x15e   :  { %377 = vmatmul.msk.f32.vlgmr.msra.gmra.mxu2 %vm238_vm2, %v226_v50 }
 0x166   :  { %378 = vmatmul.msk.f32.gmra.mxu2 %vm238_vm2, %v227_v51 }
 0x1e1   :  { %v260_v4 = vpop.f32.mrf.mxu2 }
 0x1e2   :  { %v261_v8 = vadd.f32 %v260_v4, %v231_v5 }
 0x1e4   :  { %v266_v11 = vmax.f32 %v261_v8, 0.0 }
 0x1e9   :  { %v263_v7 = vpop.f32.mrf.mxu2 }
 0x1ea   :  { %v264_v9 = vadd.f32 %v263_v7, %v236_v6 }
 0x1ec   :  { %v267_v10 = vmax.f32 %v264_v9, 0.0 }
 0x1ee   :  { %290 = vmatpush.msrb.mxu3 %v267_v10 }
 0x1f0   :  { %291 = vmatpush.msrb.mxu3 %v266_v11 }
 0x1f1   :  { %379 = vmatmul.msk.f32.vlgmr.msrb.gmra.mxu3 %vm94_vm0, %v268_v3 }
 0x274   :  { %v293_v15 = vpop.f32.mrf.mxu3 }
 0x275   :  { %v294_v16 = vadd.f32 %v293_v15, %v272_v14 }
 0x277   :  { %v296_v17 = vmax.f32 %v294_v16, 0.0 }
 0x279   :  { %321 = vmatpush.msra.mxu3 %v296_v17 }
 0x27a   :  { %380 = vmatmul.msk.f32.vlgmr.msra.gmra.mxu3 %vm303_vm3, %v297_v12 }
 0x2fd   :  { %v323_v19 = vpop.f32.mrf.mxu3 }
 0x2fe   :  { %v324_v20 = vadd.f32 %v323_v19, %v301_v18 }
 0x300   :  { %v327_v21 = vsel %vm326_vm4, %v324_v20, -inf }
 0x301   :  { %v328_v22 = vrot.slane %v327_v21, 4 }
 0x303   :  { %v329_v23 = vmax.f32 %v327_v21, %v328_v22 }
 0x305   :  { %v330_v24 = vrot.slane %v329_v23, 2 }
 0x307   :  { %v331_v25 = vmax.f32 %v329_v23, %v330_v24 }
 0x309   :  { %v332_v26 = vrot.slane %v331_v25, 1 }
 0x30b   :  { %v333_v27 = vmax.f32 %v331_v25, %v332_v26 }
 0x30d   :  { %v334_v28 = vsub.f32 %v324_v20, %v333_v27 }
 0x30f   :  { %v335_v29 = vmul.f32 1.442695, %v334_v28 }
 0x311   :  { %403 = vpow2.f32 %v335_v29 }
 0x317   :  { %v404_v30 = vpop.eup %403 }
 0x318   :  { %v337_v31 = vsel %vm326_vm4, %v404_v30, 0.0 }
 0x319   :  { %v338_v32 = vrot.slane %v337_v31, 4 }
 0x31b   :  { %v339_v33 = vadd.f32 %v338_v32, %v337_v31 }
 0x31d   :  { %v340_v34 = vrot.slane %v339_v33, 2 }
 0x31f   :  { %v341_v35 = vadd.f32 %v340_v34, %v339_v33 }
 0x321   :  { %v342_v36 = vrot.slane %v341_v35, 1 }
 0x323   :  { %v343_v37 = vadd.f32 %v342_v36, %v341_v35 }
 0x325   :  { %405 = vrcp.f32 %v343_v37 }
 0x32b   :  { %v406_v38 = vpop.eup %405 }
 0x32c   :  { %v345_v39 = vmul.f32 %v406_v38, %v404_v30 }
 0x32e   :  { %346 = vst [vmem:[#allocation7] sm:$0x7f] %v345_v39 }
 0x32f   :  { %357 = dma.vmem_to_hbm [thread:$0]  %s353_s1, 128, %s355_s23, [#allocation4]  }
 0x330   :  { %483 = dma.done.wait [#allocation4], 128  }
 0x331   :  { %484 = vsyncadd [#allocation4], 4294967168 }
 0x332   :  { %362 = vsyncpa [#allocation3], 1 }
 0x333   :  { %363 = vsyncpa [#allocation6], 1 }
 0x334   :  { %364 = vsyncpa [#allocation4], 1 }

</bundles_post_ra>
